<compile_context>
chip_gen: v7x
topology: tpu7x:2x2x1
jax: 0.10.0
libtpu: 0.0.40
codegen_flags: <defaults>
</compile_context>

<pallas_src>
import jax
import jax.numpy as jnp
from jax.experimental import pallas as pl
from jax.experimental.pallas import tpu as pltpu


def _round_up(n, m):
    return ((n + m - 1) // m) * m


def mlp_kernel(x_ref, w1t_ref, b1_ref, w2t_ref, b2_ref, o_ref):
    # x_ref  : [tile_b, 10] f32   (native [batch, feature] layout)
    # w1t_ref: [10, 10]     bf16  ([in, out])
    # b1_ref : [1, 10]      f32
    # w2t_ref: [10, 5]      bf16  ([in, out])
    # b2_ref : [1, 5]       f32
    # o_ref  : [tile_b, 5]  f32
    x = x_ref[...].astype(jnp.bfloat16)            # cast fused in-kernel (VPU, free)
    h = jnp.dot(x, w1t_ref[...], preferred_element_type=jnp.float32)
    h = jnp.maximum(h + b1_ref[...], 0.0)          # bias + ReLU in f32
    y = jnp.dot(h.astype(jnp.bfloat16), w2t_ref[...],
                preferred_element_type=jnp.float32)
    o_ref[...] = jax.nn.sigmoid(y + b2_ref[...]).astype(o_ref.dtype)


def my_model_forward(x, w1, b1, w2, b2, *, max_tile_b=8192):
    """x: [B, 10] f32; w1: [10, 10]; b1: [10]; w2: [5, 10]; b2: [5].
    Returns [B, 5] f32, matching PyTorch MyModel.forward semantics."""
    B, d_in = x.shape
    d_hid = w1.shape[0]
    d_out = w2.shape[0]

    # Grid / tiling: batch on sublanes.  Small B -> one grid step; large B ->
    # big tiles (amortizes ~0.35us/step overhead) with minimal padding.
    n_steps = max(1, pl.cdiv(B, max_tile_b))
    tile_b = _round_up(pl.cdiv(B, n_steps), 8)     # sublane multiple of 8
    b_pad = n_steps * tile_b

    x_p = jnp.pad(x, ((0, b_pad - B), (0, 0))) if b_pad != B else x

    # Weights are tiny and VMEM-resident; keep PyTorch values, transpose to
    # [in, out] so the kernel needs no in-kernel transposes; bf16 MXU operands.
    w1t = w1.T.astype(jnp.bfloat16)                 # [d_in, d_hid]
    w2t = w2.T.astype(jnp.bfloat16)                 # [d_hid, d_out]
    b1r = b1.reshape(1, d_hid).astype(jnp.float32)  # row bias
    b2r = b2.reshape(1, d_out).astype(jnp.float32)

    out = pl.pallas_call(
        mlp_kernel,
        out_shape=jax.ShapeDtypeStruct((b_pad, d_out), jnp.float32),
        grid_spec=pltpu.PrefetchScalarGridSpec(
            num_scalar_prefetch=0,
            grid=(n_steps,),
            in_specs=[
                pl.BlockSpec((tile_b, d_in), lambda i: (i, 0)),   # x tile (pipelined)
                pl.BlockSpec((d_in, d_hid), lambda i: (0, 0)),    # W1^T (VMEM-resident)
                pl.BlockSpec((1, d_hid), lambda i: (0, 0)),       # b1
                pl.BlockSpec((d_hid, d_out), lambda i: (0, 0)),   # W2^T
                pl.BlockSpec((1, d_out), lambda i: (0, 0)),       # b2
            ],
            out_specs=pl.BlockSpec((tile_b, d_out), lambda i: (i, 0)),
        ),
        compiler_params=pltpu.CompilerParams(
            dimension_semantics=("parallel",),      # batch blocks across TCs (v7x)
            vmem_limit_bytes=48 * 1024 * 1024,      # lane-padded f32 blocks need >16 MiB at tile_b=8192
        ),
    )(x_p, w1t, b1r, w2t, b2r)

    # Output already in PyTorch [B, d_out] layout; only drop padding rows if any.
    return out[:B] if b_pad != B else out


def init_params(key):
    """Deterministic init matching nn.Linear shapes: d1 weight (10,10), bias (10,);
    d2 weight (5,10), bias (5,)."""
    k1, k2, k3, k4 = jax.random.split(key, 4)
    bound1 = 1.0 / jnp.sqrt(10.0)
    w1 = jax.random.uniform(k1, (10, 10), jnp.float32, -bound1, bound1)  # [out, in]
    b1 = jax.random.uniform(k2, (10,), jnp.float32, -bound1, bound1)
    bound2 = 1.0 / jnp.sqrt(10.0)
    w2 = jax.random.uniform(k3, (5, 10), jnp.float32, -bound2, bound2)   # [out, in]
    b2 = jax.random.uniform(k4, (5,), jnp.float32, -bound2, bound2)
    return w1, b1, w2, b2


def reference_forward(x, w1, b1, w2, b2):
    h = jnp.maximum(x @ w1.T + b1, 0.0)
    return jax.nn.sigmoid(h @ w2.T + b2)


if __name__ == "__main__":
    w1, b1, w2, b2 = init_params(jax.random.PRNGKey(42))

    # Small batch: single grid step, no padding.
    x_small = jax.random.normal(jax.random.PRNGKey(0), (8, 10), jnp.float32)
    out_small = jax.block_until_ready(my_model_forward(x_small, w1, b1, w2, b2))
    ref_small = reference_forward(x_small, w1, b1, w2, b2)
    assert out_small.shape == (8, 5)
    assert jnp.allclose(out_small, ref_small, atol=2e-2, rtol=2e-2)

    # Non-multiple batch: exercises minimal padding + slice path (still one tile).
    x_odd = jax.random.normal(jax.random.PRNGKey(1), (133, 10), jnp.float32)
    out_odd = jax.block_until_ready(my_model_forward(x_odd, w1, b1, w2, b2))
    ref_odd = reference_forward(x_odd, w1, b1, w2, b2)
    assert out_odd.shape == (133, 5)
    assert jnp.allclose(out_odd, ref_odd, atol=2e-2, rtol=2e-2)

    print("KERNEL_OK")
</pallas_src>

<mosaic_0001>
module attributes {stable_mosaic.version = 11 : i64} {
  func.func @mlp_kernel(%arg0: i32, %arg1: memref<8x10xf32, #tpu.memory_space<vmem>>, %arg2: memref<10x10xbf16, #tpu.memory_space<vmem>>, %arg3: memref<1x10xf32, #tpu.memory_space<vmem>>, %arg4: memref<10x5xbf16, #tpu.memory_space<vmem>>, %arg5: memref<1x5xf32, #tpu.memory_space<vmem>>, %arg6: memref<8x5xf32, #tpu.memory_space<vmem>>) attributes {dimension_semantics = [#tpu.dimension_semantics<parallel>], iteration_bounds = array<i64: 1>, scalar_prefetch = 0 : i64, scratch_operands = 0 : i64, tpu.core_type = #tpu.core_type<tc>, window_params = [{transform_indices = @transform_0, window_bounds = array<i64: 8, 10>}, {pipeline_mode = #tpu.pipeline_mode<synchronous>, transform_indices = @transform_1, window_bounds = array<i64: 10, 10>}, {pipeline_mode = #tpu.pipeline_mode<synchronous>, transform_indices = @transform_2, window_bounds = array<i64: 1, 10>}, {pipeline_mode = #tpu.pipeline_mode<synchronous>, transform_indices = @transform_3, window_bounds = array<i64: 10, 5>}, {pipeline_mode = #tpu.pipeline_mode<synchronous>, transform_indices = @transform_4, window_bounds = array<i64: 1, 5>}, {transform_indices = @transform_5, window_bounds = array<i64: 8, 5>}]} {
    %c0 = arith.constant 0 : index
    %c0_0 = arith.constant 0 : index
    %0 = vector.load %arg1[%c0, %c0_0] : memref<8x10xf32, #tpu.memory_space<vmem>>, vector<8x10xf32>
    %1 = arith.truncf %0 : vector<8x10xf32> to vector<8x10xbf16>
    %c0_1 = arith.constant 0 : index
    %c0_2 = arith.constant 0 : index
    %2 = vector.load %arg2[%c0_1, %c0_2] : memref<10x10xbf16, #tpu.memory_space<vmem>>, vector<10x10xbf16>
    %cst = arith.constant dense<0.000000e+00> : vector<8x10xf32>
    %3 = tpu.matmul %1, %2, %cst {dimension_numbers = #tpu.dot_dimension_numbers<[1], [0], [0], [1], [0, 0, 1, 1], [], []>} : vector<8x10xbf16>, vector<10x10xbf16>, vector<8x10xf32> -> vector<8x10xf32>
    %c0_3 = arith.constant 0 : index
    %c0_4 = arith.constant 0 : index
    %4 = vector.load %arg3[%c0_3, %c0_4] : memref<1x10xf32, #tpu.memory_space<vmem>>, vector<1x10xf32>
    %5 = vector.broadcast %4 : vector<1x10xf32> to vector<8x10xf32>
    %6 = arith.addf %3, %5 : vector<8x10xf32>
    %cst_5 = arith.constant 0.000000e+00 : f32
    %7 = vector.broadcast %cst_5 : f32 to vector<8x10xf32>
    %8 = arith.maximumf %6, %7 : vector<8x10xf32>
    %9 = arith.truncf %8 : vector<8x10xf32> to vector<8x10xbf16>
    %c0_6 = arith.constant 0 : index
    %c0_7 = arith.constant 0 : index
    %10 = vector.load %arg4[%c0_6, %c0_7] : memref<10x5xbf16, #tpu.memory_space<vmem>>, vector<10x5xbf16>
    %cst_8 = arith.constant dense<0.000000e+00> : vector<8x5xf32>
    %11 = tpu.matmul %9, %10, %cst_8 {dimension_numbers = #tpu.dot_dimension_numbers<[1], [0], [0], [1], [0, 0, 1, 1], [], []>} : vector<8x10xbf16>, vector<10x5xbf16>, vector<8x5xf32> -> vector<8x5xf32>
    %c0_9 = arith.constant 0 : index
    %c0_10 = arith.constant 0 : index
    %12 = vector.load %arg5[%c0_9, %c0_10] : memref<1x5xf32, #tpu.memory_space<vmem>>, vector<1x5xf32>
    %13 = vector.broadcast %12 : vector<1x5xf32> to vector<8x5xf32>
    %14 = arith.addf %11, %13 : vector<8x5xf32>
    %15 = arith.negf %14 : vector<8x5xf32>
    %16 = math.exp %15 : vector<8x5xf32>
    %cst_11 = arith.constant 1.000000e+00 : f32
    %17 = vector.broadcast %cst_11 : f32 to vector<8x5xf32>
    %18 = arith.addf %17, %16 : vector<8x5xf32>
    %19 = arith.divf %17, %18 : vector<8x5xf32>
    %c0_12 = arith.constant 0 : index
    %c0_13 = arith.constant 0 : index
    %20 = vector.load %arg6[%c0_12, %c0_13] : memref<8x5xf32, #tpu.memory_space<vmem>>, vector<8x5xf32>
    tpu.vector_store %arg6[%c0_12, %c0_13], %19 {strides = array<i32>} : memref<8x5xf32, #tpu.memory_space<vmem>>, vector<8x5xf32>,
    return
  }
  func.func @transform_0(%arg0: i32) -> (i32, i32) {
    %c0_i32 = arith.constant 0 : i32
    %c0_i32_0 = arith.constant 0 : i32
    return %arg0, %c0_i32 : i32, i32
  }
  func.func @transform_1(%arg0: i32) -> (i32, i32) {
    %c0_i32 = arith.constant 0 : i32
    %c0_i32_0 = arith.constant 0 : i32
    %c0_i32_1 = arith.constant 0 : i32
    return %c0_i32, %c0_i32_0 : i32, i32
  }
  func.func @transform_2(%arg0: i32) -> (i32, i32) {
    %c0_i32 = arith.constant 0 : i32
    %c0_i32_0 = arith.constant 0 : i32
    %c0_i32_1 = arith.constant 0 : i32
    return %c0_i32, %c0_i32_0 : i32, i32
  }
  func.func @transform_3(%arg0: i32) -> (i32, i32) {
    %c0_i32 = arith.constant 0 : i32
    %c0_i32_0 = arith.constant 0 : i32
    %c0_i32_1 = arith.constant 0 : i32
    return %c0_i32, %c0_i32_0 : i32, i32
  }
  func.func @transform_4(%arg0: i32) -> (i32, i32) {
    %c0_i32 = arith.constant 0 : i32
    %c0_i32_0 = arith.constant 0 : i32
    %c0_i32_1 = arith.constant 0 : i32
    return %c0_i32, %c0_i32_0 : i32, i32
  }
  func.func @transform_5(%arg0: i32) -> (i32, i32) {
    %c0_i32 = arith.constant 0 : i32
    %c0_i32_0 = arith.constant 0 : i32
    return %arg0, %c0_i32 : i32, i32
  }
}

</mosaic_0001>

<bundles_post_ra>
// kernel: tpu_custom_call.1
= control target key start
LH: loop header
LB: loop body
LE: loop exit
PB: predicated region body
PF: predicated region fallthrough
CT: control target
= control target key end

     0   :  { %10 = vsyncpa [#allocation3], 0  ;;  %s340_s0 = inlined_call_operand.vmem [shape: f32[8,10], index: 0, kind: input, shape index: {}]   ;;  %s341_s1 = inlined_call_operand.hbm [shape: bf16[10,10], index: 1, kind: input, shape index: {}]   ;;  %s342_s2 = inlined_call_operand.vmem [shape: f32[1,10], index: 2, kind: input, shape index: {}]   ;;  %s343_s3 = inlined_call_operand.vmem [shape: bf16[10,5], index: 3, kind: input, shape index: {}]   ;;  %s344_s4 = inlined_call_operand.vmem [shape: f32[1,5], index: 4, kind: input, shape index: {}]   ;;  %s345_s5 = inlined_call_operand.hbm [shape: f32[8,5], index: 5, kind: output, shape index: {}]  }
   0x1   :  { %11 = vsyncpa [#allocation4], 0  ;;  %s268_s18 = smov [#allocation2]   ;;  %s220_s22 = scalar_lea.hbm %s341_s1, 128 }
   0x2   :  { %s19_s19 = sshll.u32 %s268_s18, 4  ;;  %p221_p0 = scmp.ne.s32.totalorder %s341_s1, %s220_s22  ;;  %s20_s19 = int_to_ptr.vmem [resolvable:$true] %s19_s19 }
   0x3   :  { %p224_p1 = scmp.lt.u32.totalorder %s220_s22, %s341_s1 }
   0x5   :  { %p226_p2 = pnand %p224_p1, %p221_p0 }
   0x7   :  { %229 = shalt.err (!%p226_p2)
}
   0x8   :  { %s230_s27 = scalar_lea.vmem %s20_s19, 128  ;;  %p235_p4 = scmp.lt.s32.totalorder %s20_s19, %s20_s19 }
   0x9   :  { %p231_p3 = scmp.ne.s32.totalorder %s20_s19, %s230_s27  ;;  %p236_p5 = scmp.lt.s32.totalorder %s230_s27, %s230_s27 }
   0xb   :  { %p237_p6 = por %p236_p5, %p235_p4 }
   0xd   :  { %p238_p7 = pnand %p237_p6, %p231_p3 }
   0xf   :  { %241 = shalt.err (!%p238_p7)
}
  0x10   :  { %s269_s28 = smov 64   ;;  %s270_s29 = smov 4  }
  0x11   :  { %25 = dma.hbm_to_vmem [thread:$0]  %s341_s1, 128, %s20_s19, [#allocation3], %s269_s28, %s269_s28, %s270_s29  }
  0x12   :  { %264 = dma.done.wait [#allocation3], 128  }
  0x13   :  { %265 = vsyncadd [#allocation3], 4294967168  ;;  %v271_v0 = vmov 0.0   ;;  %vm272_vm0 = vmmov 0   ;;  %vm56_vm1 = vcmask 1044480   ;;  %v36_v2 = vld [vmem:[%s340_s0] sm:$0xff] }
  0x14   :  { %196 = vmatprep.subr.bf16.mxu0 %v271_v0  ;;  %198 = vmatprep.mubr.msk.bf16.mxu0 %vm272_vm0, %v271_v0  ;;  %v214_v1 = vld [vmem:[#allocation2] sm:$0x1f]   ;;  %v37_v4 = vpack.c.bf16 %v36_v2, %v36_v2  ;;  %vm52_vm2 = vcmask 80896   ;;  %vm168_vm3 = vcmask 39936  }
  0x15   :  { %202 = vmatprep.subr.bf16.mxu1 %v271_v0  ;;  %204 = vmatprep.mubr.msk.bf16.mxu1 %vm272_vm0, %v271_v0  ;;  %v58_v3 = vsel %vm56_vm1, %v214_v1, 0  ;;  %v215_v5 = vld [vmem:[%s343_s3] sm:$0x1f]  }
  0x16   :  { %197 = vmatpush3.bf16.msra.mxu0 %v58_v3  ;;  %v120_v6 = vsel %vm56_vm1, %v215_v5, 0  ;;  %v185_v7 = vld [vmem:[%s342_s2] ss:$0 sm:$0xff]  ;;  %s273_s2 = smov [#allocation5]  }
  0x17   :  { %203 = vmatpush3.bf16.msra.mxu1 %v120_v6  ;;  %v188_v15 = vld [vmem:[%s344_s4] ss:$0 sm:$0xff]  ;;  %s176_s3 = sshll.u32 %s273_s2, 4  ;;  %s177_s3 = int_to_ptr.vmem [resolvable:$true] %s176_s3 }
  0x18   :  { %s242_s13 = scalar_lea.vmem %s177_s3, 128  ;;  %p247_p9 = scmp.lt.s32.totalorder %s177_s3, %s177_s3 }
  0x19   :  { %199 = vmatmul.mubr.msk.bf16.vlgmr.msra.gmra.mrb[0].mxu0 %vm52_vm2, %v37_v4  ;;  %p243_p8 = scmp.ne.s32.totalorder %s177_s3, %s242_s13  ;;  %p248_p10 = scmp.lt.s32.totalorder %s242_s13, %s242_s13 }
  0x1b   :  { %p249_p11 = por %p248_p10, %p247_p9 }
  0x1d   :  { %p250_p12 = pnand %p249_p11, %p243_p8 }
  0xec   :  { %v94_v8 = vpop.f32.mrb[0].mxu0 }
  0xed   :  { %v95_v9 = vadd.f32 %v185_v7, %v94_v8  ;;  %v200_v10 = vpop.f32.mrb[1].mxu0 }
  0xee   :  { %v97_v11 = vpop.f32.mrb[2].mxu0 }
  0xef   :  { %v100_v12 = vmax.f32 %v95_v9, 0.0  ;;  %v201_v13 = vpop.f32.mrb[3].mxu0 }
  0xf1   :  { %v101_v14 = vpack.c.bf16 %v100_v12, %v100_v12 }
  0xf3   :  { %205 = vmatmul.mubr.msk.bf16.vlgmr.msra.gmra.mrb[0].mxu1 %vm52_vm2, %v101_v14 }
 0x1c6   :  { %v156_v16 = vpop.f32.mrb[0].mxu1 }
 0x1c7   :  { %v157_v17 = vadd.f32 %v188_v15, %v156_v16  ;;  %v206_v18 = vpop.f32.mrb[1].mxu1 }
 0x1c8   :  { %v159_v19 = vpop.f32.mrb[2].mxu1 }
 0x1c9   :  { %v191_v20 = vmul.f32 -1.442695, %v157_v17  ;;  %v207_v21 = vpop.f32.mrb[3].mxu1 }
 0x1cb   :  { %216 = vpow2.f32 %v191_v20 }
 0x1d5   :  { %v217_v22 = vpop.eup %216 }
 0x1d6   :  { %v165_v23 = vadd.f32 1.0, %v217_v22 }
 0x1d8   :  { %218 = vrcp.f32 %v165_v23 }
 0x1e2   :  { %v219_v24 = vpop.eup %218 }
 0x1e3   :  { %169 = vst.msk [vmem:[#allocation5] sm:$0xff] %vm168_vm3, %v219_v24 }
 0x1e4   :  { %253 = shalt.err (!%p250_p12)
}
 0x1e5   :  { %s254_s15 = scalar_lea.hbm %s345_s5, 128 }
 0x1e6   :  { %p255_p13 = scmp.ne.s32.totalorder %s345_s5, %s254_s15  ;;  %p258_p0 = scmp.lt.u32.totalorder %s254_s15, %s345_s5 }
 0x1e8   :  { %p260_p1 = pnand %p258_p0, %p255_p13 }
 0x1ea   :  { %263 = shalt.err (!%p260_p1)
}
 0x1eb   :  { %179 = dma.vmem_to_hbm [thread:$0]  %s177_s3, 128, %s345_s5, [#allocation4]  }
 0x1ec   :  { %266 = dma.done.wait [#allocation4], 128  }
 0x1ed   :  { %267 = vsyncadd [#allocation4], 4294967168 }
 0x1ee   :  { %183 = vsyncpa [#allocation3], 1 }
 0x1ef   :  { %184 = vsyncpa [#allocation4], 1 }

</bundles_post_ra>
